<compile_context>
chip_gen: v5e
topology: v5e:2x2
jax: 0.10.0
libtpu: 0.0.40
codegen_flags: <defaults>
</compile_context>

<pallas_src>
import jax
import jax.numpy as jnp
from jax.experimental import pallas as pl
from jax.experimental.pallas import tpu as pltpu

N_ATOMS = 16
N_CGS = 4
TAU = 1.0            # forward() takes tau but F.gumbel_softmax is called with default tau=1.0
LANE_TILE = 16384    # max lane-axis tile (multiple of 128); ~6.8 MiB double-buffered VMEM
MIN_SPLIT = 8192     # once L >= this, force >=2 grid steps so both v7x cores get work
MIN_PALLAS_LANES = 512  # below this, plain-JAX fallback beats the launch overhead


def cgae_kernel(x_ref, w_ref, xc_ref, recon_ref, cg_ref):
    # x_ref: (A, Lt) lane-dense block of the (A, 3*B) coordinate slab.
    # w_ref: (2A+C, A) fused weight [C_mat ; P_c ; mnt_c] (batch invariant).
    a = xc_ref.shape[0]
    c = cg_ref.shape[0]
    # One MXU matmul produces centered coords, reconstruction and CG coords.
    y = jnp.dot(w_ref[...], x_ref[...], preferred_element_type=jnp.float32)
    xc_ref[...] = y[:a, :]                # C_mat @ x        == x - mean_over_atoms(x)
    recon_ref[...] = y[a:2 * a, :]        # P_c   @ x        == decode^T @ M_norm^T @ xc
    cg_ref[...] = y[2 * a:2 * a + c, :]   # mnt_c @ x        == M_norm^T @ xc


def _choose_tiling(L):
    """Pick (lane_tile, Lp, n_tiles): big tiles, minimal padding, >=2 tiles for big L."""
    n = max(1, -(-L // LANE_TILE))            # ceil(L / LANE_TILE)
    if L >= MIN_SPLIT and n < 2:
        n = 2                                  # give v7x's second TensorCore work
    lane_tile = -(-L // n)                     # ceil(L / n)
    lane_tile = ((lane_tile + 127) // 128) * 128
    Lp = n * lane_tile
    return lane_tile, Lp, n


def _gumbel_params(assign_map, decode, gumbel_noise, tau, n_atoms):
    """Batch-invariant parameter math, hoisted out of the kernel."""
    M = jax.nn.softmax((assign_map + gumbel_noise) / tau, axis=-1)     # (A, C)
    M_norm = M / jnp.sum(M, axis=0, keepdims=True)                     # (A, C)
    mnt = M_norm.T                                                     # (C, A)
    dect = decode.T                                                    # (A, C)
    c_mat = jnp.eye(n_atoms, dtype=jnp.float32) - jnp.full(
        (n_atoms, n_atoms), 1.0 / n_atoms, dtype=jnp.float32)          # centering
    mnt_c = mnt @ c_mat                                                # (C, A)
    p_c = dect @ mnt_c                                                 # (A, A)
    w = jnp.concatenate([c_mat, p_c, mnt_c], axis=0)                   # (2A+C, A)
    return M, w


def cgae_forward(xyz, assign_map, decode, gumbel_noise, tau=TAU,
                 n_atoms=N_ATOMS, n_cgs=N_CGS, use_pallas=None,
                 return_lane_major=False):
    # xyz.reshape(-1, n_atoms, 3)
    B = xyz.size // (n_atoms * 3)
    xyz = xyz.reshape(B, n_atoms, 3).astype(jnp.float32)
    assign_map = assign_map.astype(jnp.float32)
    decode = decode.astype(jnp.float32)
    gumbel_noise = gumbel_noise.astype(jnp.float32)

    M, W = _gumbel_params(assign_map, decode, gumbel_noise, tau, n_atoms)
    M_norm = M / jnp.sum(M, axis=0, keepdims=True)

    L = 3 * B
    if use_pallas is None:
        use_pallas = L >= MIN_PALLAS_LANES

    if not use_pallas:
        # Tiny-batch fallback: plain JAX, identical math, no launch overhead.
        shift = xyz.mean(1)
        xc = xyz - shift[:, None, :]
        cg_xyz = jnp.einsum('bij,in->bnj', xc, M_norm)
        xyz_recon = jnp.einsum('bnj,ni->bij', cg_xyz, decode)
        return xc, xyz_recon, M, cg_xyz

    # Lane-major layout: batch*coord on the lane axis, atoms on sublanes.
    # TODO(synk): for a fully fused pipeline, accept/emit lane-major (A, 3B)
    # slabs directly (return_lane_major=True) so these transposes fold into
    # the neighbouring ops instead of costing an extra HBM pass.
    x2d = jnp.transpose(xyz, (1, 0, 2)).reshape(n_atoms, L)            # (A, 3B)

    lane_tile, Lp, n_tiles = _choose_tiling(L)
    if Lp != L:
        x2d = jnp.pad(x2d, ((0, 0), (0, Lp - L)))   # zero cols: benign, sliced off

    out_shapes = (
        jax.ShapeDtypeStruct((n_atoms, Lp), jnp.float32),   # centered xyz slab
        jax.ShapeDtypeStruct((n_atoms, Lp), jnp.float32),   # xyz_recon slab
        jax.ShapeDtypeStruct((n_cgs, Lp), jnp.float32),     # cg_xyz slab
    )

    grid_spec = pltpu.PrefetchScalarGridSpec(
        num_scalar_prefetch=0,
        grid=(n_tiles,),
        in_specs=[
            pl.BlockSpec((n_atoms, lane_tile), lambda l: (0, l)),
            pl.BlockSpec((2 * n_atoms + n_cgs, n_atoms), lambda l: (0, 0)),
        ],
        out_specs=[
            pl.BlockSpec((n_atoms, lane_tile), lambda l: (0, l)),
            pl.BlockSpec((n_atoms, lane_tile), lambda l: (0, l)),
            pl.BlockSpec((n_cgs, lane_tile), lambda l: (0, l)),
        ],
    )

    xc2d, recon2d, cg2d = pl.pallas_call(
        cgae_kernel,
        out_shape=out_shapes,
        grid_spec=grid_spec,
        compiler_params=pltpu.CompilerParams(
            dimension_semantics=("parallel",)),   # independent tiles -> megacore
    )(x2d, W)

    if return_lane_major:
        return xc2d[:, :L], recon2d[:, :L], M, cg2d[:, :L]

    # Back to the PyTorch output layout.
    xyz_c = xc2d[:, :L].reshape(n_atoms, B, 3).transpose(1, 0, 2)         # (B, A, 3)
    xyz_recon = recon2d[:, :L].reshape(n_atoms, B, 3).transpose(1, 0, 2)  # (B, A, 3)
    cg_xyz = cg2d[:, :L].reshape(n_cgs, B, 3).transpose(1, 0, 2)          # (B, C, 3)
    return xyz_c, xyz_recon, M, cg_xyz


def cgae_reference(xyz, assign_map, decode, gumbel_noise,
                   n_atoms=N_ATOMS, tau=TAU):
    # Plain-JAX reference of the PyTorch forward (same gumbel noise).
    B = xyz.size // (n_atoms * 3)
    xyz = xyz.reshape(B, n_atoms, 3).astype(jnp.float32)
    shift = xyz.mean(1)
    xyz = xyz - shift[:, None, :]
    M = jax.nn.softmax((assign_map + gumbel_noise) / tau, axis=-1)
    M_norm = M / M.sum(-2)[None, :]
    cg_xyz = jnp.einsum('bij,in->bnj', xyz, M_norm)
    xyz_recon = jnp.einsum('bnj,ni->bij', cg_xyz, decode)
    return xyz, xyz_recon, M, cg_xyz


if __name__ == "__main__":
    key = jax.random.PRNGKey(0)
    k_xyz, k_assign, k_decode, k_gumbel, k_big = jax.random.split(key, 5)

    # Deterministic "parameters" (shapes from __init__: randn(n_atoms, n_cgs), randn(n_cgs, n_atoms)).
    assign_map = jax.random.normal(k_assign, (N_ATOMS, N_CGS), dtype=jnp.float32)
    decode = jax.random.normal(k_decode, (N_CGS, N_ATOMS), dtype=jnp.float32)
    # Gumbel noise used by F.gumbel_softmax (drawn once, shared with the reference).
    gumbel_noise = jax.random.gumbel(k_gumbel, (N_ATOMS, N_CGS), dtype=jnp.float32)

    # 1) Tiny batch (B=2), forced through the Pallas path to check padding + kernel math.
    B = 2
    xyz_small = jax.random.normal(k_xyz, (B, N_ATOMS * 3), dtype=jnp.float32)
    outs = cgae_forward(xyz_small, assign_map, decode, gumbel_noise, use_pallas=True)
    outs = jax.block_until_ready(outs)
    refs = cgae_reference(xyz_small, assign_map, decode, gumbel_noise)
    for o, r in zip(outs, refs):
        assert o.shape == r.shape and o.dtype == r.dtype
        assert jnp.allclose(o, r, atol=1e-5, rtol=1e-5), "small-batch mismatch vs reference"

    # 2) Larger batch: exercises the real tiling (>=2 lane tiles -> megacore path).
    Bb = 4096                               # L = 12288 lanes -> 2 tiles of 6144
    xyz_big = jax.random.normal(k_big, (Bb, N_ATOMS * 3), dtype=jnp.float32)
    outs_b = cgae_forward(xyz_big, assign_map, decode, gumbel_noise)
    outs_b = jax.block_until_ready(outs_b)
    refs_b = cgae_reference(xyz_big, assign_map, decode, gumbel_noise)
    for o, r in zip(outs_b, refs_b):
        assert o.shape == r.shape and o.dtype == r.dtype
        assert jnp.allclose(o, r, atol=1e-5, rtol=1e-5), "large-batch mismatch vs reference"

    print("KERNEL_OK")
</pallas_src>

<mosaic_0001>
module attributes {stable_mosaic.version = 11 : i64} {
  func.func @cgae_kernel(%arg0: i32, %arg1: memref<16x128xf32, #tpu.memory_space<vmem>>, %arg2: memref<36x16xf32, #tpu.memory_space<vmem>>, %arg3: memref<16x128xf32, #tpu.memory_space<vmem>>, %arg4: memref<16x128xf32, #tpu.memory_space<vmem>>, %arg5: memref<4x128xf32, #tpu.memory_space<vmem>>) attributes {dimension_semantics = [#tpu.dimension_semantics<parallel>], iteration_bounds = array<i64: 1>, scalar_prefetch = 0 : i64, scratch_operands = 0 : i64, tpu.core_type = #tpu.core_type<tc>, window_params = [{transform_indices = @transform_0, window_bounds = array<i64: 16, 128>}, {pipeline_mode = #tpu.pipeline_mode<synchronous>, transform_indices = @transform_1, window_bounds = array<i64: 36, 16>}, {transform_indices = @transform_2, window_bounds = array<i64: 16, 128>}, {transform_indices = @transform_3, window_bounds = array<i64: 16, 128>}, {transform_indices = @transform_4, window_bounds = array<i64: 4, 128>}]} {
    %c0 = arith.constant 0 : index
    %c0_0 = arith.constant 0 : index
    %0 = vector.load %arg2[%c0, %c0_0] : memref<36x16xf32, #tpu.memory_space<vmem>>, vector<36x16xf32>
    %c0_1 = arith.constant 0 : index
    %c0_2 = arith.constant 0 : index
    %1 = vector.load %arg1[%c0_1, %c0_2] : memref<16x128xf32, #tpu.memory_space<vmem>>, vector<16x128xf32>
    %cst = arith.constant dense<0.000000e+00> : vector<36x128xf32>
    %2 = tpu.matmul %0, %1, %cst {dimension_numbers = #tpu.dot_dimension_numbers<[1], [0], [0], [1], [0, 0, 1, 1], [], []>} : vector<36x16xf32>, vector<16x128xf32>, vector<36x128xf32> -> vector<36x128xf32>
    %3 = vector.extract_strided_slice %2 {offsets = [0, 0], sizes = [16, 128], strides = [1, 1]} : vector<36x128xf32> to vector<16x128xf32>
    %c0_3 = arith.constant 0 : index
    %c0_4 = arith.constant 0 : index
    %4 = vector.load %arg3[%c0_3, %c0_4] : memref<16x128xf32, #tpu.memory_space<vmem>>, vector<16x128xf32>
    tpu.vector_store %arg3[%c0_3, %c0_4], %3 {strides = array<i32>} : memref<16x128xf32, #tpu.memory_space<vmem>>, vector<16x128xf32>,
    %5 = vector.extract_strided_slice %2 {offsets = [16, 0], sizes = [16, 128], strides = [1, 1]} : vector<36x128xf32> to vector<16x128xf32>
    %c0_5 = arith.constant 0 : index
    %c0_6 = arith.constant 0 : index
    %6 = vector.load %arg4[%c0_5, %c0_6] : memref<16x128xf32, #tpu.memory_space<vmem>>, vector<16x128xf32>
    tpu.vector_store %arg4[%c0_5, %c0_6], %5 {strides = array<i32>} : memref<16x128xf32, #tpu.memory_space<vmem>>, vector<16x128xf32>,
    %7 = vector.extract_strided_slice %2 {offsets = [32, 0], sizes = [4, 128], strides = [1, 1]} : vector<36x128xf32> to vector<4x128xf32>
    %c0_7 = arith.constant 0 : index
    %c0_8 = arith.constant 0 : index
    %8 = vector.load %arg5[%c0_7, %c0_8] : memref<4x128xf32, #tpu.memory_space<vmem>>, vector<4x128xf32>
    tpu.vector_store %arg5[%c0_7, %c0_8], %7 {strides = array<i32>} : memref<4x128xf32, #tpu.memory_space<vmem>>, vector<4x128xf32>,
    return
  }
  func.func @transform_0(%arg0: i32) -> (i32, i32) {
    %c0_i32 = arith.constant 0 : i32
    %c0_i32_0 = arith.constant 0 : i32
    return %c0_i32, %arg0 : i32, i32
  }
  func.func @transform_1(%arg0: i32) -> (i32, i32) {
    %c0_i32 = arith.constant 0 : i32
    %c0_i32_0 = arith.constant 0 : i32
    %c0_i32_1 = arith.constant 0 : i32
    return %c0_i32, %c0_i32_0 : i32, i32
  }
  func.func @transform_2(%arg0: i32) -> (i32, i32) {
    %c0_i32 = arith.constant 0 : i32
    %c0_i32_0 = arith.constant 0 : i32
    return %c0_i32, %arg0 : i32, i32
  }
  func.func @transform_3(%arg0: i32) -> (i32, i32) {
    %c0_i32 = arith.constant 0 : i32
    %c0_i32_0 = arith.constant 0 : i32
    return %c0_i32, %arg0 : i32, i32
  }
  func.func @transform_4(%arg0: i32) -> (i32, i32) {
    %c0_i32 = arith.constant 0 : i32
    %c0_i32_0 = arith.constant 0 : i32
    return %c0_i32, %arg0 : i32, i32
  }
}

</mosaic_0001>

<bundles_post_ra>
// kernel: tpu_custom_call.1
= control target key start
LH: loop header
LB: loop body
LE: loop exit
PB: predicated region body
PF: predicated region fallthrough
CT: control target
= control target key end

     0   :  { %10 = vsyncpa [#allocation3], 0  ;;  %vm23_vm0 = vcmask 130048   ;;  %s284_s0 = inlined_call_operand.vmem [shape: f32[16,128], index: 0, kind: input, shape index: {}]   ;;  %s285_s1 = inlined_call_operand.vmem [shape: f32[36,16], index: 1, kind: input, shape index: {}]   ;;  %s286_s2 = inlined_call_operand.hbm [shape: f32[16,128], index: 2, kind: output, shape index: {0}]   ;;  %s287_s3 = inlined_call_operand.hbm [shape: f32[16,128], index: 3, kind: output, shape index: {1}]   ;;  %s288_s4 = inlined_call_operand.hbm [shape: f32[4,128], index: 4, kind: output, shape index: {2}]  }
   0x1   :  { %v22_v0 = vld [vmem:[%s284_s0 + $0x8] sm:$0xff]  ;;  %v21_v1 = vld [vmem:[%s284_s0] sm:$0xff]  ;;  %v18_v2 = vld [vmem:[%s285_s1 + $0x10] sm:$0xff] }
   0x2   :  { %133 = vmatpush.msra.mxu2 %v22_v0  ;;  %134 = vmatpush.msra.mxu3 %v22_v0  ;;  %v20_v3 = vld [vmem:[%s285_s1 + $0x20] sm:$0xf] }
   0x3   :  { %53 = vmatpush.msra.mxu0 %v22_v0  ;;  %132 = vmatpush.msra.mxu1 %v22_v0 }
   0x4   :  { %11 = vsyncpa [#allocation5], 0  ;;  %136 = vmatpush.msra.mxu2 %v21_v1  ;;  %137 = vmatpush.msra.mxu3 %v21_v1  ;;  %v16_v4 = vld [vmem:[%s285_s1] sm:$0xff]  ;;  %v17_v5 = vld [vmem:[%s285_s1 + $0x8] sm:$0xff]  ;;  %s219_s28 = smov [#allocation2]   ;;  %s82_s6 = sshll.u32 %s286_s2, 4  ;;  %s83_s6 = int_to_ptr.hbm [resolvable:$true] %s82_s6 }
   0x5   :  { %129 = vmatmul.msk.f32.vlgmr.msra.gmra.mxu2 %vm23_vm0, %v18_v2  ;;  %131 = vmatmul.msk.f32.vlgmr.msra.gmra.mxu3 %vm23_vm0, %v20_v3  ;;  %v19_v6 = vld [vmem:[%s285_s1 + $0x18] sm:$0xff]  ;;  %s80_s29 = sshll.u32 %s219_s28, 4  ;;  %s220_s7 = smov 128   ;;  %s81_s29 = int_to_ptr.vmem [resolvable:$true] %s80_s29 }
   0x6   :  { %54 = vmatpush.msra.mxu0 %v21_v1  ;;  %135 = vmatpush.msra.mxu1 %v21_v1  ;;  %s221_s8 = smov 8   ;;  %s222_s1 = smov [#allocation4]  }
   0x7   :  { %127 = vmatmul.msk.f32.vlgmr.msra.gmra.mxu0 %vm23_vm0, %v16_v4  ;;  %128 = vmatmul.msk.f32.vlgmr.msra.gmra.mxu1 %vm23_vm0, %v17_v5  ;;  %s93_s9 = sshll.u32 %s222_s1, 4  ;;  %s95_s12 = sshll.u32 %s287_s3, 4  ;;  %s94_s9 = int_to_ptr.vmem [resolvable:$true] %s93_s9  ;;  %s96_s12 = int_to_ptr.hbm [resolvable:$true] %s95_s12 }
   0x8   :  { %s223_s2 = smov [#allocation6]   ;;  %s109_s16 = sshll.u32 %s288_s4, 4  ;;  %s110_s16 = int_to_ptr.hbm [resolvable:$true] %s109_s16 }
   0x9   :  { %s107_s13 = sshll.u32 %s223_s2, 4  ;;  %s108_s13 = int_to_ptr.vmem [resolvable:$true] %s107_s13 }
   0xd   :  { %130 = vmatmul.msk.f32.gmra.mxu2 %vm23_vm0, %v19_v6 }
  0x84   :  { %v56_v7 = vpop.f32.mrf.mxu0  ;;  %v59_v8 = vpop.f32.mrf.mxu1 }
  0x85   :  { %71 = vst [vmem:[#allocation2] sm:$0xff] %v56_v7 }
  0x86   :  { %72 = vst [vmem:[#allocation2 + $0x8] sm:$0xff] %v59_v8 }
  0x87   :  { %88 = dma.vmem_to_hbm [thread:$0]  %s81_s29, 256, %s83_s6, [#allocation3], %s220_s7, %s220_s7, %s221_s8  }
  0x88   :  { %v62_v9 = vpop.f32.mrf.mxu2  ;;  %v68_v10 = vpop.f32.mrf.mxu3 }
  0x89   :  { %73 = vst [vmem:[#allocation4] sm:$0xff] %v62_v9 }
  0x8a   :  { %75 = vst [vmem:[#allocation6] sm:$0xf] %v68_v10 }
  0x90   :  { %v65_v11 = vpop.f32.mrf.mxu2 }
  0x91   :  { %74 = vst [vmem:[#allocation4 + $0x8] sm:$0xff] %v65_v11 }
  0x92   :  { %101 = dma.vmem_to_hbm [thread:$0]  %s94_s9, 256, %s96_s12, [#allocation5], %s220_s7, %s220_s7, %s221_s8  }
  0x93   :  { %112 = dma.vmem_to_hbm [thread:$0]  %s108_s13, 64, %s110_s16, [#allocation5]  }
  0x94   :  { %215 = dma.done.wait [#allocation3], 256  }
  0x95   :  { %216 = vsyncadd [#allocation3], 4294967040 }
  0x96   :  { %217 = dma.done.wait [#allocation5], 320  }
  0x97   :  { %218 = vsyncadd [#allocation5], 4294966976 }
  0x98   :  { %125 = vsyncpa [#allocation3], 1 }
  0x99   :  { %126 = vsyncpa [#allocation5], 1 }

</bundles_post_ra>
